<compile_context>
chip_gen: v7x
topology: tpu7x:2x2x1
jax: 0.10.0
libtpu: 0.0.40
codegen_flags: <defaults>
</compile_context>

<pallas_src>
import functools

import jax
import jax.numpy as jnp
from jax.experimental import pallas as pl
from jax.experimental.pallas import tpu as pltpu


# ---------------------------------------------------------------------------
# kernels
# ---------------------------------------------------------------------------

def _se_onepass_kernel(x_ref, w1_ref, w2_ref, o_ref, *, inv_hw):
    # x_ref: (C, HW)  w1_ref: (C//r, C)  w2_ref: (C, C//r)  o_ref: (C, HW)
    # Squeeze: exact f32 channel means (block spans the true HW, no padding).
    y = jnp.sum(x_ref[...].astype(jnp.float32), axis=-1, keepdims=True) * inv_hw  # (C, 1)
    # Excitation: tiny mat-vecs in f32 for parity with the reference.
    h = jnp.dot(w1_ref[...].astype(jnp.float32), y,
                preferred_element_type=jnp.float32)                               # (C//r, 1)
    h = jnp.maximum(h, 0.0)
    s = jax.nn.sigmoid(jnp.dot(w2_ref[...].astype(jnp.float32), h,
                               preferred_element_type=jnp.float32))               # (C, 1)
    # Rescale in the input dtype (no full-size f32 temp kept live).
    o_ref[...] = (x_ref[...] * s.astype(x_ref.dtype)).astype(o_ref.dtype)


def _pool_kernel(x_ref, sums_ref, *, hw, t_hw, has_tail):
    # x_ref: (C, t_hw)   sums_ref: (C, 1) f32 accumulator, resident across HW axis.
    @pl.when(pl.program_id(1) == 0)
    def _():
        sums_ref[...] = jnp.zeros_like(sums_ref)

    x = x_ref[...].astype(jnp.float32)

    if has_tail:
        # The last spatial tile extends past HW: its out-of-bounds contents are
        # unspecified, so mask them before accumulating.  Non-tail tiles stay
        # on the fast unmasked path.
        h = pl.program_id(1)
        last = pl.num_programs(1) - 1

        @pl.when(h != last)
        def _():
            sums_ref[...] += jnp.sum(x, axis=-1, keepdims=True)

        @pl.when(h == last)
        def _():
            lane = jax.lax.broadcasted_iota(jnp.int32, x.shape, 1)
            valid = lane < (hw - h * t_hw)
            sums_ref[...] += jnp.sum(jnp.where(valid, x, 0.0),
                                     axis=-1, keepdims=True)
    else:
        sums_ref[...] += jnp.sum(x, axis=-1, keepdims=True)


def _rescale_kernel(x_ref, s_ref, o_ref):
    # x_ref: (C, t_hw)   s_ref: (C, 1) already in x's dtype   o_ref: (C, t_hw)
    # Tail-tile garbage lanes are read but never written (Pallas masks stores).
    o_ref[...] = (x_ref[...] * s_ref[...]).astype(o_ref.dtype)


# ---------------------------------------------------------------------------
# wrapper
# ---------------------------------------------------------------------------

def _round_up(n, m):
    return pl.cdiv(n, m) * m


def _device_vmem_bytes():
    # Per-core VMEM capacity: 128 MiB on v5e/v6e, 64 MiB per TensorCore on v7x.
    try:
        return int(pltpu.get_tpu_info().vmem_capacity_bytes)
    except Exception:
        return 64 << 20  # conservative (v7x-sized) fallback


def _vmem_limit(block_bytes, vmem_cap, margin=2 << 20):
    # Double-buffered footprint of every block + margin, clamped generation-
    # aware: leave headroom under 128 MiB (v5e/v6e) vs 64 MiB/TC (v7x).
    hi = (96 << 20) if vmem_cap >= (100 << 20) else (44 << 20)
    need = int(sum(2 * int(b) for b in block_bytes)) + margin
    return int(min(max(need, 32 << 20), hi))


def se_layer(x, w1, w2, *, force_path=None, donate_x=False):
    """SE forward. x: (B, C, H, W); w1: (C//r, C); w2: (C, C//r) (PyTorch Linear layout).

    donate_x=True aliases the activation's HBM buffer for the output
    (only use when the caller does not need x afterwards).
    """
    B, C, H, W = x.shape
    HW = H * W
    hidden = w1.shape[0]
    itemsize = jnp.dtype(x.dtype).itemsize
    w_itemsize = jnp.dtype(w1.dtype).itemsize

    vmem_cap = _device_vmem_bytes()
    # VMEM footprint of one full (C, HW) tile in its padded on-chip layout.
    per_image_vmem = _round_up(C, 8) * _round_up(HW, 128) * itemsize
    w_bytes = 2 * hidden * C * w_itemsize

    # One-pass window derived from device VMEM: in + out, double buffered
    # (~4x per-image) plus weights, at <= ~half the capacity.
    # -> ~15-16 MiB/image on 128 MiB v5e/v6e, ~6-7 MiB/image on 64 MiB v7x.
    onepass_max = (vmem_cap // 2 - 2 * w_bytes - (4 << 20)) // 4
    onepass_max = int(min(max(onepass_max, 2 << 20), 16 << 20))

    use_onepass = per_image_vmem <= onepass_max
    if HW < 128:
        # Tiny spatial extent: always one-pass (two-pass tiling needs >=128 lanes).
        # TODO(synk): an extreme-C / tiny-HW input could exceed the one-pass
        # VMEM budget; such shapes are not expected for SE layers.
        use_onepass = True
    elif vmem_cap < (100 << 20) and B < 4 and HW >= 256:
        # v7x-like parts (2 TensorCores, <=64 MiB VMEM/TC): with a small batch a
        # grid=(B,) one-pass launch leaves a core idle; prefer the HW-tiled path
        # so both cores get grid work.
        use_onepass = False

    if force_path == "onepass":
        use_onepass = True
    elif force_path == "twopass" and HW >= 128:
        use_onepass = False

    x3 = x.reshape(B, C, HW)
    alias = {0: 0} if donate_x else {}

    if use_onepass:
        # ---- one-pass path: whole image per grid step (single HBM read of x) ----
        out = pl.pallas_call(
            functools.partial(_se_onepass_kernel, inv_hw=1.0 / HW),
            out_shape=jax.ShapeDtypeStruct((B, C, HW), x.dtype),
            grid_spec=pltpu.PrefetchScalarGridSpec(
                num_scalar_prefetch=0,
                grid=(B,),
                in_specs=[
                    pl.BlockSpec((pl.Squeezed(), C, HW), lambda b: (b, 0, 0)),
                    pl.BlockSpec((hidden, C), lambda b: (0, 0)),
                    pl.BlockSpec((C, hidden), lambda b: (0, 0)),
                ],
                out_specs=pl.BlockSpec((pl.Squeezed(), C, HW), lambda b: (b, 0, 0)),
            ),
            compiler_params=pltpu.CompilerParams(
                dimension_semantics=("parallel",),
                vmem_limit_bytes=_vmem_limit(
                    [per_image_vmem, per_image_vmem, w_bytes], vmem_cap),
            ),
            input_output_aliases=alias,
        )(x3, w1, w2)
    else:
        # ---- two-pass path: pool -> (XLA excitation) -> rescale ----
        # Spatial tile: lane-dense multiple of 128, ~4 MiB per block, never wider
        # than the floor-128 spatial extent; prefer an exact divisor of HW so
        # there is no ragged tail at all when HW is lane-aligned.
        target_bytes = 4 << 20
        lane_cap = max(128, (target_bytes // max(1, C * itemsize)) // 128 * 128)
        lane_cap = min(lane_cap, max((HW // 128) * 128, 128))
        tHW = None
        if HW % 128 == 0:
            for t in range(lane_cap, 127, -128):
                if HW % t == 0:
                    tHW = t
                    break
        if tHW is None:
            tHW = lane_cap
        nHW = pl.cdiv(HW, tHW)
        has_tail = (HW % tHW) != 0

        block_bytes = _round_up(C, 8) * tHW * itemsize
        sums_bytes = _round_up(C, 8) * 128 * 4  # (C, 1) f32 in padded layout

        # pass 1: per-channel sums, accumulated across the "arbitrary" HW axis.
        sums = pl.pallas_call(
            functools.partial(_pool_kernel, hw=HW, t_hw=tHW, has_tail=has_tail),
            out_shape=jax.ShapeDtypeStruct((B, C, 1), jnp.float32),
            grid_spec=pltpu.PrefetchScalarGridSpec(
                num_scalar_prefetch=0,
                grid=(B, nHW),
                in_specs=[
                    pl.BlockSpec((pl.Squeezed(), C, tHW), lambda b, h: (b, 0, h)),
                ],
                out_specs=pl.BlockSpec((pl.Squeezed(), C, 1), lambda b, h: (b, 0, 0)),
            ),
            compiler_params=pltpu.CompilerParams(
                dimension_semantics=("parallel", "arbitrary"),
                vmem_limit_bytes=_vmem_limit([block_bytes, sums_bytes], vmem_cap),
            ),
        )(x3)

        # Excitation: negligible FLOPs -> plain XLA on the pooled (B, C) tensor
        # (avoids degenerate M=1 MXU matmuls inside the kernel).
        y = sums[:, :, 0] * (1.0 / HW)                               # (B, C) f32
        h = jnp.maximum(jnp.dot(y, w1.T.astype(jnp.float32)), 0.0)  # (B, C//r)
        s = jax.nn.sigmoid(jnp.dot(h, w2.T.astype(jnp.float32)))    # (B, C)
        scales = s.astype(x.dtype)[:, :, None]                      # (B, C, 1)

        # pass 2: channel-wise rescale; output declared at the true (B, C, HW)
        # shape, so tail-tile stores are masked by Pallas (no pad, no slice).
        out = pl.pallas_call(
            _rescale_kernel,
            out_shape=jax.ShapeDtypeStruct((B, C, HW), x.dtype),
            grid_spec=pltpu.PrefetchScalarGridSpec(
                num_scalar_prefetch=0,
                grid=(B, nHW),
                in_specs=[
                    pl.BlockSpec((pl.Squeezed(), C, tHW), lambda b, h: (b, 0, h)),
                    pl.BlockSpec((pl.Squeezed(), C, 1), lambda b, h: (b, 0, 0)),
                ],
                out_specs=pl.BlockSpec((pl.Squeezed(), C, tHW), lambda b, h: (b, 0, h)),
            ),
            compiler_params=pltpu.CompilerParams(
                dimension_semantics=("parallel", "parallel"),
                vmem_limit_bytes=_vmem_limit(
                    [block_bytes, block_bytes, sums_bytes], vmem_cap),
            ),
            input_output_aliases=alias,
        )(x3, scales)

    return out.reshape(B, C, H, W)


def se_layer_ref(x, w1, w2):
    # pure-JAX reference mirroring the PyTorch forward
    y = jnp.mean(x, axis=(2, 3))                 # (B, C)
    y = jnp.maximum(y @ w1.T, 0.0)               # (B, C//r)
    y = jax.nn.sigmoid(y @ w2.T)                 # (B, C)
    return x * y[:, :, None, None]


if __name__ == "__main__":
    def _check(B, C, H, W, reduction, seed):
        hidden = max(C // reduction, 1)
        key = jax.random.PRNGKey(seed)
        kx, k1, k2 = jax.random.split(key, 3)
        x = jax.random.normal(kx, (B, C, H, W), dtype=jnp.float32)
        # deterministic synthetic weights (PyTorch Linear layout: (out, in), no bias)
        w1 = jax.random.normal(k1, (hidden, C), dtype=jnp.float32) * (1.0 / jnp.sqrt(C))
        w2 = jax.random.normal(k2, (C, hidden), dtype=jnp.float32) * (1.0 / jnp.sqrt(hidden))
        ref = se_layer_ref(x, w1, w2)
        for path in (None, "onepass", "twopass"):
            out = jax.block_until_ready(se_layer(x, w1, w2, force_path=path))
            assert out.shape == (B, C, H, W)
            assert jnp.allclose(out, ref, atol=1e-5, rtol=1e-5), (path, B, C, H, W)

    # lane-aligned spatial extent (HW = 256): exercises exact-divisor tiling.
    _check(2, 32, 16, 16, 16, 0)
    # ragged spatial extent (HW = 169): exercises the full-dim one-pass block
    # and the masked-tail pool / masked-store rescale paths.
    _check(2, 16, 13, 13, 4, 1)

    print("KERNEL_OK")
</pallas_src>

<mosaic_0001>
module attributes {stable_mosaic.version = 11 : i64} {
  func.func @_pool_kernel(%arg0: i32, %arg1: i32, %arg2: memref<1x32x256xf32, #tpu.memory_space<vmem>>, %arg3: memref<1x32x1xf32, #tpu.memory_space<vmem>>) attributes {dimension_semantics = [#tpu.dimension_semantics<parallel>, #tpu.dimension_semantics<arbitrary>], iteration_bounds = array<i64: 2, 1>, scalar_prefetch = 0 : i64, scratch_operands = 0 : i64, tpu.core_type = #tpu.core_type<tc>, window_params = [{transform_indices = @transform_0, window_bounds = array<i64: 1, 32, 256>}, {transform_indices = @transform_1, window_bounds = array<i64: 1, 32, 1>}]} {
    %c0_i32 = arith.constant 0 : i32
    %0 = arith.cmpi eq, %arg1, %c0_i32 : i32
    %1 = arith.extui %0 : i1 to i32
    %c0_i32_0 = arith.constant 0 : i32
    %2 = arith.cmpi ne, %1, %c0_i32_0 : i32
    scf.if %2 {
      %cst_9 = arith.constant 0.000000e+00 : f32
      %13 = vector.broadcast %cst_9 : f32 to vector<32x1xf32>
      %c0_10 = arith.constant 0 : index
      %c0_11 = arith.constant 0 : index
      %c0_12 = arith.constant 0 : index
      %14 = vector.load %arg3[%c0_10, %c0_11, %c0_12] : memref<1x32x1xf32, #tpu.memory_space<vmem>>, vector<1x32x1xf32>
      %15 = vector.shape_cast %14 : vector<1x32x1xf32> to vector<32x1xf32>
      %16 = vector.shape_cast %13 : vector<32x1xf32> to vector<1x32x1xf32>
      tpu.vector_store %arg3[%c0_10, %c0_11, %c0_12], %16 {strides = array<i32>} : memref<1x32x1xf32, #tpu.memory_space<vmem>>, vector<1x32x1xf32>,
    } else {
    }
    %c0 = arith.constant 0 : index
    %c0_1 = arith.constant 0 : index
    %c0_2 = arith.constant 0 : index
    %3 = vector.load %arg2[%c0, %c0_1, %c0_2] : memref<1x32x256xf32, #tpu.memory_space<vmem>>, vector<1x32x256xf32>
    %4 = vector.shape_cast %3 : vector<1x32x256xf32> to vector<32x256xf32>
    %c0_3 = arith.constant 0 : index
    %c0_4 = arith.constant 0 : index
    %c0_5 = arith.constant 0 : index
    %5 = vector.load %arg3[%c0_3, %c0_4, %c0_5] : memref<1x32x1xf32, #tpu.memory_space<vmem>>, vector<1x32x1xf32>
    %6 = vector.shape_cast %5 : vector<1x32x1xf32> to vector<32x1xf32>
    %cst = arith.constant dense<0.000000e+00> : vector<32xf32>
    %7 = vector.multi_reduction <add>, %4, %cst [1] : vector<32x256xf32> to vector<32xf32>
    %8 = vector.shape_cast %7 : vector<32xf32> to vector<32x1xf32>
    %9 = arith.addf %6, %8 : vector<32x1xf32>
    %c0_6 = arith.constant 0 : index
    %c0_7 = arith.constant 0 : index
    %c0_8 = arith.constant 0 : index
    %10 = vector.load %arg3[%c0_6, %c0_7, %c0_8] : memref<1x32x1xf32, #tpu.memory_space<vmem>>, vector<1x32x1xf32>
    %11 = vector.shape_cast %10 : vector<1x32x1xf32> to vector<32x1xf32>
    %12 = vector.shape_cast %9 : vector<32x1xf32> to vector<1x32x1xf32>
    tpu.vector_store %arg3[%c0_6, %c0_7, %c0_8], %12 {strides = array<i32>} : memref<1x32x1xf32, #tpu.memory_space<vmem>>, vector<1x32x1xf32>,
    return
  }
  func.func @transform_0(%arg0: i32, %arg1: i32) -> (i32, i32, i32) {
    %c0_i32 = arith.constant 0 : i32
    %c0_i32_0 = arith.constant 0 : i32
    return %arg0, %c0_i32, %arg1 : i32, i32, i32
  }
  func.func @transform_1(%arg0: i32, %arg1: i32) -> (i32, i32, i32) {
    %c0_i32 = arith.constant 0 : i32
    %c0_i32_0 = arith.constant 0 : i32
    %c0_i32_1 = arith.constant 0 : i32
    return %arg0, %c0_i32, %c0_i32_0 : i32, i32, i32
  }
}

</mosaic_0001>

<bundles_post_ra>
// kernel: tpu_custom_call.1
= control target key start
LH: loop header
LB: loop body
LE: loop exit
PB: predicated region body
PF: predicated region fallthrough
CT: control target
= control target key end

     0   :  { %6 = vsyncpa [#allocation3], 0  ;;  %s589_s0 = inlined_call_operand.hbm [shape: f32[2,32,256], index: 0, kind: input, shape index: {}]   ;;  %s590_s1 = inlined_call_operand.vmem [shape: f32[2,32,1], index: 1, kind: output, shape index: {}]  }
   0x1   :  { %8 = vsyncpa [#allocation3 + $0x1], 0  ;;  %s443_s6 = smov 0   ;;  %s445_s7 = smov 0  }
   0x2   :  { %s447_s8 = smov 0   ;;  %s449_s9 = smov 0  }
   0x3   :  { %s451_s10 = smov 0   ;;  %s453_s11 = smov 0  }
   0x4 LB: > { %s274_s12 = sadd.s32 4294967295, %s427_s11   ;;  %s26_s13 = sadd.s32 1, %s423_s10  ;;  %s427_s11 = sphi %s453_s11, %s14_s11   ;;  %s423_s10 = sphi %s451_s10, %s598_s10   ;;  %s419_s9 = sphi %s449_s9, %s597_s9   ;;  %s415_s8 = sphi %s447_s8, %s596_s8   ;;  %s411_s7 = sphi %s445_s7, %s595_s7   ;;  %s407_s6 = sphi %s443_s6, %s594_s6  }
   0x5   : > { %p28_p0 = scmp.ge.s32.totalorder %s26_s13, 2  ;;  %s35_s14 = sadd.s32 1, %s415_s8 }
   0x6   : > { %p42_p1 = scmp.ne.s32.totalorder %s415_s8, %s411_s7  ;;  %p43_p2 = scmp.eq.s32.totalorder %s427_s11, 0 }
   0x7   : > { %s600_s13 = smov (%p28_p0, %s26_s13), 0  ;;  %p48_p4 = scmp.ne.s32.totalorder %s411_s7, %s407_s6 }
   0x8   : > { %p479_p3 = por %p43_p2, %p42_p1  ;;  %s30_s16 = ssub.s32 %s423_s10, %s600_s13 }
   0x9   : > { %p49_p5 = scmp.eq.s32.totalorder %s274_s12, 0  ;;  %p33_p6 = scmp.eq.s32.totalorder %s30_s16, 0 }
   0xa   : > { %p295_p8 = scmp.lt.s32.totalorder %s427_s11, 2  ;;  %s98_s19 = sand.u32 1, %s415_s8  }
   0xb   : > { %p486_p7 = por %p49_p5, %p48_p4  ;;  %s287_s20 = sshll.u32 %s423_s10, 10 }
   0xc   : > { %s492_s18 = scalar_select %p33_p6, %s415_s8, %s35_s14  }
   0xd   : > { %s278_s21 = sshll.u32 %s98_s19, 6  ;;  %s499_s24 = scalar_lea.hbm %s589_s0, %s287_s20 }
   0xe   : > { %s102_s25 = scalar_lea.vmem [#allocation2], %s278_s21  ;;  %p503_p9 = pnand %p295_p8, %p479_p3 }
   0xf   : > { %s111_s26 = sshll.u32 %s102_s25, 4  ;;  %s509_s28 = scalar_lea.sflag [#allocation3], %s98_s19  ;;  %s507_s26 = int_to_ptr.vmem [resolvable:$true] %s111_s26 }
  0x10   : > { %s347_s29 = scalar_lea.hbm %s499_s24, 1024  ;;  %p349_p11 = pneg %p503_p9 }
  0x11   : > { %p348_p10 = scmp.ne.s32.totalorder %s499_s24, %s347_s29  ;;  %s352_s3 = scalar_lea.hbm %s589_s0, 2048 }
  0x12   : > { %p353_p0 = scmp.lt.u32.totalorder %s499_s24, %s589_s0  ;;  %p354_p1 = scmp.lt.u32.totalorder %s352_s3, %s347_s29 }
  0x13   : > { %p350_p12 = pnand %p349_p11, %p348_p10  ;;  %p356_p3 = scmp.lt.u32.totalorder %s347_s29, %s499_s24 }
  0x14   : > { %p355_p2 = por %p354_p1, %p353_p0 }
  0x15   : > { %p351_p13 = pneg %p350_p12 }
  0x16   : > { %p357_p4 = por %p356_p3, %p355_p2 }
  0x18   : > { %p358_p5 = pnand %p357_p4, %p351_p13 }
  0x1a   : > { %361 = shalt.err (!%p358_p5)
}
  0x1b   : > { %s362_s6 = scalar_lea.vmem %s507_s26, 1024  ;;  %s429_s12 = smov [#allocation2]  }
  0x1c   : > { %p363_p6 = scmp.ne.s32.totalorder %s507_s26, %s362_s6  ;;  %s367_s14 = sshll.u32 %s429_s12, 4  ;;  %s368_s14 = int_to_ptr.vmem [resolvable:$false] %s367_s14 }
  0x1d   : > { %s369_s15 = scalar_lea.vmem %s368_s14, 2048  ;;  %p370_p12 = scmp.lt.s32.totalorder %s507_s26, %s368_s14 }
  0x1e   : > { %p365_p8 = pnand %p363_p6, %p349_p11  ;;  %p371_p0 = scmp.lt.s32.totalorder %s369_s15, %s362_s6 }
  0x20   : > { %p366_p10 = pneg %p365_p8  ;;  %p372_p1 = por %p371_p0, %p370_p12 }
  0x22   : > { %p373_p2 = pnand %p372_p1, %p366_p10 }
  0x24   : > { %376 = shalt.err (!%p373_p2)
}
  0x25   : > { %s430_s16 = smov 256   ;;  %s431_s19 = smov 16  }
  0x26   : > { %294 = dma.hbm_to_vmem [thread:$0]  (!%p503_p9), %s499_s24, 1024, %s507_s26, %s509_s28, %s430_s16, %s430_s16, %s431_s19  }
  0x27   : > { %p281_p11 = scmp.ge.s32.totalorder %s427_s11, 1  ;;  %p119_p13 = scmp.lt.s32.totalorder %s427_s11, 3 }
  0x29   : > { %p120_p3 = pnand %p281_p11, %p119_p13 }
  0x2a   : > { %s125_s20 = sand.u32 (!%p120_p3), 1, %s411_s7  }
  0x2b   : > { %123 = sbr.rel (%p120_p3) target bundleno = 204 (0xcc), region = 24  ;;  %s282_s21 = sshll.u32 (!%p120_p3), %s125_s20, 6 }
  0x2c   : > { %s126_s22 = scalar_lea.sflag (!%p120_p3), [#allocation3], %s125_s20  ;;  %s129_s23 = scalar_lea.vmem (!%p120_p3), [#allocation2], %s282_s21 }
  0x32   : > { %402 = dma.done.wait (%p486_p7), %s126_s22, 1024  }
  0x33   : > { %404 = vsyncadd (%p486_p7), %s126_s22, 4294966272  ;;  %p149_p4 = scmp.lt.s32.totalorder %s419_s9, 1  ;;  %vm158_vm0 = vcmask 7168   ;;  %v432_v0 = vmov 0.0   ;;  %v167_v1 = vld [vmem:[%s129_s23 + $0x20] sm:$0xff]  ;;  %v168_v2 = vld [vmem:[%s129_s23 + $0x28] sm:$0xff] }
  0x34   : > { %v163_v3 = vld [vmem:[%s129_s23] sm:$0xff]  ;;  %v181_v4 = vadd.f32 %v168_v2, %v167_v1  ;;  %v164_v5 = vld [vmem:[%s129_s23 + $0x8] sm:$0xff]  ;;  %v169_v6 = vld [vmem:[%s129_s23 + $0x30] sm:$0xff] }
  0x35   : > { %s602_s9 = smov (!%p149_p4, %s419_s9), 1  ;;  %v170_v7 = vld [vmem:[%s129_s23 + $0x38] sm:$0xff]  ;;  %v175_v8 = vadd.f32 %v164_v5, %v163_v3  ;;  %v165_v9 = vld [vmem:[%s129_s23 + $0x10] sm:$0xff] }
  0x36   : > { %s288_s24 = sshll.u32 %s602_s9, 5  ;;  %v166_v10 = vld [vmem:[%s129_s23 + $0x18] sm:$0xff]  ;;  %182 = vadd.xlane.f32.xlu1 %v181_v4  ;;  %v184_v11 = vadd.f32 %v170_v7, %v169_v6 }
  0x37   : > { %s549_s27 = scalar_lea.vmem %s590_s1, %s288_s24  ;;  %176 = vadd.xlane.f32.xlu0 %v175_v8  ;;  %v178_v12 = vadd.f32 %v166_v10, %v165_v9 }
  0x38   : > { %161 = vst.msk [vmem:[%s549_s27 + $0x10] sm:$0xff] %vm158_vm0, %v432_v0  ;;  %159 = vst.msk [vmem:[%s549_s27] sm:$0xff] %vm158_vm0, %v432_v0 }
  0x39   : > { %160 = vst.msk [vmem:[%s549_s27 + $0x8] sm:$0xff] %vm158_vm0, %v432_v0  ;;  %162 = vst.msk [vmem:[%s549_s27 + $0x18] sm:$0xff] %vm158_vm0, %v432_v0 }
  0x3a   : > { %185 = vadd.xlane.f32.xlu1 %v184_v11 }
  0x3b   : > { %179 = vadd.xlane.f32.xlu0 %v178_v12 }
  0x3f   : > { %v173_v13 = vld [vmem:[%s549_s27 + $0x10] sm:$0xff]  ;;  %v171_v14 = vld [vmem:[%s549_s27] sm:$0xff] }
  0x40   : > { %v174_v19 = vld [vmem:[%s549_s27 + $0x18] sm:$0xff]  ;;  %v172_v20 = vld [vmem:[%s549_s27 + $0x8] sm:$0xff] }
  0xc3   : > { %v183_v15 = vpop.xlane.xlu1 %182 }
  0xc4   : > { %v189_v16 = vadd.f32 %v183_v15, %v173_v13  ;;  %v177_v17 = vpop.xlane.xlu0 %176 }
  0xc5   : > { %v187_v18 = vadd.f32 %v177_v17, %v171_v14 }
  0xc6   : > { %194 = vst.msk [vmem:[%s549_s27 + $0x10] sm:$0xff] %vm158_vm0, %v189_v16 }
  0xc7   : > { %192 = vst.msk [vmem:[%s549_s27] sm:$0xff] %vm158_vm0, %v187_v18  ;;  %v186_v21 = vpop.xlane.xlu1 %185 }
  0xc8   : > { %v190_v22 = vadd.f32 %v186_v21, %v174_v19  ;;  %v180_v23 = vpop.xlane.xlu0 %179 }
  0xc9   : > { %v188_v24 = vadd.f32 %v180_v23, %v172_v20 }
  0xca   : > { %195 = vst.msk [vmem:[%s549_s27 + $0x18] sm:$0xff] %vm158_vm0, %v190_v22 }
  0xcb   : > { %193 = vst.msk [vmem:[%s549_s27 + $0x8] sm:$0xff] %vm158_vm0, %v188_v24 }
  0xcc PF: > { %s14_s11 = sadd.s32 1, %s427_s11   ;;  %s594_s6 = smov %s411_s7 }
  0xcd   : > { %p11_p7 = scmp.ge.s32.totalorder %s14_s11, 4   ;;  %s595_s7 = smov %s415_s8 }
  0xce   : > { %s596_s8 = smov %s492_s18  ;;  %s597_s9 = smov %s423_s10 }
  0xcf   : > { %s598_s10 = smov %s600_s13  ;;  %13 = sbr.rel (!%p11_p7) target bundleno = 4 (0x4), region = 68 }
  0xd6   :  { %217 = vsyncpa [#allocation3], 1 }
  0xd7   :  { %219 = vsyncpa [#allocation3 + $0x1], 1 }

</bundles_post_ra>
